<compile_context>
chip_gen: v5e
topology: v5e:2x2
jax: 0.10.0
libtpu: 0.0.40
codegen_flags: <defaults>
</compile_context>

<pallas_src>
import jax
import jax.numpy as jnp
from jax.experimental import pallas as pl
from jax.experimental.pallas import tpu as pltpu


# ----------------------------- kernel --------------------------------------

def _attention_gate_kernel(g_ref, x_ref, wg_ref, wx_ref, b_ref, wpsi_ref,
                           bpsi_ref, o_ref):
    """One (Nb, C, T_HW) tile: folded Conv1x1+BN branches, ReLU, psi gating."""
    nb = g_ref.shape[0]
    mxu_psi = wpsi_ref.shape[0] == 1   # host passes (1, F_int) for large F_int

    for b in range(nb):                # static unroll over the images in the block
        g = g_ref[b]                   # (F_g, T)  native dtype (f32 / bf16)
        x = x_ref[b]                   # (F_l, T)

        # Folded Conv1x1+BN branches: channel-mixing matmuls on the MXU,
        # f32 accumulation; single fused bias (bg + bx pre-summed host-side).
        g1 = jnp.dot(wg_ref[...], g, preferred_element_type=jnp.float32)
        x1 = jnp.dot(wx_ref[...], x, preferred_element_type=jnp.float32)
        a = jnp.maximum(g1 + x1 + b_ref[...], 0.0)        # (F_int, T)  ReLU

        if mxu_psi:
            # Large F_int: keep the reduction on the (otherwise idle) MXU.
            logit = jnp.dot(wpsi_ref[...], a,
                            preferred_element_type=jnp.float32) + bpsi_ref[...]
        else:
            # Small F_int: VPU multiply + sublane reduce beats an M=1 matmul.
            logit = jnp.sum(a * wpsi_ref[...], axis=0, keepdims=True) + bpsi_ref[...]

        psi = jax.nn.sigmoid(logit)    # (1, T), transcendental on the EUP
        # Gate x with psi (broadcast over channels); lane-dense unmasked store.
        o_ref[b] = (x * psi).astype(o_ref.dtype)


# ----------------------------- wrapper --------------------------------------

def attention_block_forward(g_nchw, x_nchw, folded, *,
                            max_tile_lanes=2048, max_images_per_block=8):
    """g: (N, F_g, H, W), x: (N, F_l, H, W) -> (N, F_l, H, W)."""
    N, Fg, H, W = g_nchw.shape
    Fl = x_nchw.shape[1]
    HW = H * W
    dtype = x_nchw.dtype
    itemsize = jnp.dtype(dtype).itemsize

    # Spatial tile: multiple of 128 lanes, sized so the double-buffered
    # (g + x + out) working set stays within ~16 MiB on every generation.
    act_budget = 16 * 1024 * 1024
    hw128 = pl.cdiv(HW, 128) * 128
    per_lane = 2 * (Fg + 2 * Fl) * itemsize          # g + x + out, double-buffered
    t_hw = min(max_tile_lanes, hw128,
               max(128, (act_budget // per_lane) // 128 * 128))

    # Pack several images per grid step when per-tile work is tiny, to amortize
    # the ~0.35 us per-grid-step overhead.
    per_img_tile = (Fg + 2 * Fl) * t_hw * itemsize
    nb = 1
    while (nb < N and nb < max_images_per_block
           and 2 * nb * per_img_tile <= (1 << 20)):
        nb *= 2

    n_pad = pl.cdiv(N, nb) * nb
    hw_pad = pl.cdiv(HW, t_hw) * t_hw

    # Contiguous reshapes only (NCHW consumed directly); pad to tile multiples
    # so every lane-axis block is a multiple of 128 (unmasked stores).
    g2 = jnp.pad(g_nchw.reshape(N, Fg, HW),
                 ((0, n_pad - N), (0, 0), (0, hw_pad - HW)))
    x2 = jnp.pad(x_nchw.reshape(N, Fl, HW),
                 ((0, n_pad - N), (0, 0), (0, hw_pad - HW)))

    # Matmul weights in the activation dtype (native bf16 MXU path if bf16 I/O);
    # biases / psi weight stay f32 for the f32 post-matmul math.
    weights = (folded["wg"].astype(dtype), folded["wx"].astype(dtype),
               folded["b"], folded["wpsi"], folded["bpsi"])

    def weight_spec(w):
        kwargs = {}
        if w.size * jnp.dtype(w.dtype).itemsize > (256 << 10):
            # Resident constant-index weights don't need double-buffering.
            kwargs["pipeline_mode"] = pl.Buffered(1)
        return pl.BlockSpec(w.shape, lambda i, j, nd=w.ndim: (0,) * nd, **kwargs)

    act_bytes = 2 * nb * (Fg + 2 * Fl) * t_hw * itemsize
    w_bytes = 2 * sum(w.size * jnp.dtype(w.dtype).itemsize for w in weights)
    # Explicit scoped-VMEM limit; headroom below v7x's 64 MiB physical VMEM.
    vmem_limit = int(min(56 << 20, max(32 << 20, 4 * (act_bytes + w_bytes))))

    out = pl.pallas_call(
        _attention_gate_kernel,
        out_shape=jax.ShapeDtypeStruct((n_pad, Fl, hw_pad), dtype),
        grid=(n_pad // nb, hw_pad // t_hw),
        in_specs=[pl.BlockSpec((nb, Fg, t_hw), lambda i, j: (i, 0, j)),
                  pl.BlockSpec((nb, Fl, t_hw), lambda i, j: (i, 0, j))]
                 + [weight_spec(w) for w in weights],
        out_specs=pl.BlockSpec((nb, Fl, t_hw), lambda i, j: (i, 0, j)),
        compiler_params=pltpu.CompilerParams(
            dimension_semantics=("parallel", "parallel"),
            vmem_limit_bytes=vmem_limit),
    )(g2, x2, *weights)

    return out[:N, :, :HW].reshape(N, Fl, H, W)


# ----------------------------- parameters ---------------------------------

def make_params(key, f_g, f_l, f_int, dtype=jnp.float32):
    """Raw PyTorch-style parameters: conv weights/biases + BatchNorm stats."""
    ks = jax.random.split(key, 18)

    def bn(k0, k1, k2, k3, c):
        return dict(
            gamma=1.0 + 0.1 * jax.random.normal(k0, (c,), dtype),
            beta=0.1 * jax.random.normal(k1, (c,), dtype),
            mean=0.1 * jax.random.normal(k2, (c,), dtype),
            var=1.0 + 0.1 * jax.random.uniform(k3, (c,), dtype),
        )

    return {
        "wg": 0.3 * jax.random.normal(ks[0], (f_int, f_g), dtype),
        "bg": 0.1 * jax.random.normal(ks[1], (f_int,), dtype),
        "wx": 0.3 * jax.random.normal(ks[2], (f_int, f_l), dtype),
        "bx": 0.1 * jax.random.normal(ks[3], (f_int,), dtype),
        "wpsi": 0.3 * jax.random.normal(ks[4], (1, f_int), dtype),
        "bpsi": 0.1 * jax.random.normal(ks[5], (1,), dtype),
        "bn_g": bn(ks[6], ks[7], ks[8], ks[9], f_int),
        "bn_x": bn(ks[10], ks[11], ks[12], ks[13], f_int),
        "bn_psi": bn(ks[14], ks[15], ks[16], ks[17], 1),
    }


def fold_params(raw, eps=1e-5):
    """Fold eval-mode BatchNorm into the 1x1 conv weights/biases (f32, exact)."""
    def fold(w, b, bn):
        s = bn["gamma"].astype(jnp.float32) / jnp.sqrt(
            bn["var"].astype(jnp.float32) + eps)
        wf = s[:, None] * w.astype(jnp.float32)
        bf = (s * b.astype(jnp.float32) + bn["beta"].astype(jnp.float32)
              - s * bn["mean"].astype(jnp.float32))
        return wf, bf

    wg, bg = fold(raw["wg"], raw["bg"], raw["bn_g"])
    wx, bx = fold(raw["wx"], raw["bx"], raw["bn_x"])
    wpsi, bpsi = fold(raw["wpsi"], raw["bpsi"], raw["bn_psi"])
    f_int = wg.shape[0]

    # Large F_int -> (1, F_int) row for the MXU reduce; small -> (F_int, 1)
    # column for the VPU MAC + sublane reduce.
    wpsi_arr = wpsi.reshape(1, f_int) if f_int >= 64 else wpsi.reshape(f_int, 1)

    return {
        "wg": wg,                                   # (F_int, F_g)
        "wx": wx,                                   # (F_int, F_l)
        "b": (bg + bx)[:, None],                    # (F_int, 1)  fused branch bias
        "wpsi": wpsi_arr,                           # (F_int,1) or (1,F_int), f32
        "bpsi": bpsi.reshape(1, 1),                 # (1, 1)
    }


# ----------------------------- reference ----------------------------------

def ref_forward(g, x, raw, eps=1e-5):
    """Pure-JAX reference using the RAW conv + eval-mode BN (validates fold)."""
    N, Fg, H, W = g.shape
    Fl = x.shape[1]
    g2 = g.reshape(N, Fg, H * W).astype(jnp.float32)
    x2 = x.reshape(N, Fl, H * W).astype(jnp.float32)

    def conv1x1_bn(v, w, b, bn):
        z = jnp.einsum("oc,ncp->nop", w, v) + b[None, :, None]
        s = bn["gamma"] / jnp.sqrt(bn["var"] + eps)
        return (s[None, :, None] * (z - bn["mean"][None, :, None])
                + bn["beta"][None, :, None])

    g1 = conv1x1_bn(g2, raw["wg"], raw["bg"], raw["bn_g"])
    x1 = conv1x1_bn(x2, raw["wx"], raw["bx"], raw["bn_x"])
    a = jnp.maximum(g1 + x1, 0.0)
    psi = jax.nn.sigmoid(conv1x1_bn(a, raw["wpsi"], raw["bpsi"], raw["bn_psi"]))
    return (x2 * psi).reshape(N, Fl, H, W)


if __name__ == "__main__":
    key = jax.random.PRNGKey(0)
    k_g, k_x, k_p = jax.random.split(key, 3)

    N, F_g, F_l, F_int, H, W = 2, 4, 4, 8, 16, 16
    g = jax.random.normal(k_g, (N, F_g, H, W), jnp.float32)
    x = jax.random.normal(k_x, (N, F_l, H, W), jnp.float32)

    raw = make_params(k_p, F_g, F_l, F_int)
    folded = fold_params(raw)

    out = jax.block_until_ready(attention_block_forward(g, x, folded))
    ref = jax.block_until_ready(ref_forward(g, x, raw))

    assert out.shape == (N, F_l, H, W), out.shape
    err = float(jnp.max(jnp.abs(out.astype(jnp.float32) - ref)))
    if err < 1e-4:
        print("KERNEL_OK")
    else:
        print(f"MISMATCH max_abs_err={err}")
</pallas_src>

<mosaic_0001>
module attributes {stable_mosaic.version = 11 : i64} {
  func.func @_attention_gate_kernel(%arg0: i32, %arg1: i32, %arg2: memref<2x4x256xf32, #tpu.memory_space<vmem>>, %arg3: memref<2x4x256xf32, #tpu.memory_space<vmem>>, %arg4: memref<8x4xf32, #tpu.memory_space<vmem>>, %arg5: memref<8x4xf32, #tpu.memory_space<vmem>>, %arg6: memref<8x1xf32, #tpu.memory_space<vmem>>, %arg7: memref<8x1xf32, #tpu.memory_space<vmem>>, %arg8: memref<1x1xf32, #tpu.memory_space<vmem>>, %arg9: memref<2x4x256xf32, #tpu.memory_space<vmem>>) attributes {dimension_semantics = [#tpu.dimension_semantics<parallel>, #tpu.dimension_semantics<parallel>], iteration_bounds = array<i64: 1, 1>, scalar_prefetch = 0 : i64, scratch_operands = 0 : i64, tpu.core_type = #tpu.core_type<tc>, window_params = [{transform_indices = @transform_0, window_bounds = array<i64: 2, 4, 256>}, {transform_indices = @transform_1, window_bounds = array<i64: 2, 4, 256>}, {pipeline_mode = #tpu.pipeline_mode<synchronous>, transform_indices = @transform_2, window_bounds = array<i64: 8, 4>}, {pipeline_mode = #tpu.pipeline_mode<synchronous>, transform_indices = @transform_3, window_bounds = array<i64: 8, 4>}, {pipeline_mode = #tpu.pipeline_mode<synchronous>, transform_indices = @transform_4, window_bounds = array<i64: 8, 1>}, {pipeline_mode = #tpu.pipeline_mode<synchronous>, transform_indices = @transform_5, window_bounds = array<i64: 8, 1>}, {pipeline_mode = #tpu.pipeline_mode<synchronous>, transform_indices = @transform_6, window_bounds = array<i64: 1, 1>}, {transform_indices = @transform_7, window_bounds = array<i64: 2, 4, 256>}]} {
    %c0 = arith.constant 0 : index
    %c0_0 = arith.constant 0 : index
    %c0_1 = arith.constant 0 : index
    %0 = vector.load %arg2[%c0, %c0_0, %c0_1] : memref<2x4x256xf32, #tpu.memory_space<vmem>>, vector<1x4x256xf32>
    %1 = vector.shape_cast %0 : vector<1x4x256xf32> to vector<4x256xf32>
    %c0_2 = arith.constant 0 : index
    %c0_3 = arith.constant 0 : index
    %c0_4 = arith.constant 0 : index
    %2 = vector.load %arg3[%c0_2, %c0_3, %c0_4] : memref<2x4x256xf32, #tpu.memory_space<vmem>>, vector<1x4x256xf32>
    %3 = vector.shape_cast %2 : vector<1x4x256xf32> to vector<4x256xf32>
    %c0_5 = arith.constant 0 : index
    %c0_6 = arith.constant 0 : index
    %4 = vector.load %arg4[%c0_5, %c0_6] : memref<8x4xf32, #tpu.memory_space<vmem>>, vector<8x4xf32>
    %cst = arith.constant dense<0.000000e+00> : vector<8x256xf32>
    %5 = tpu.matmul %4, %1, %cst {dimension_numbers = #tpu.dot_dimension_numbers<[1], [0], [0], [1], [0, 0, 1, 1], [], []>} : vector<8x4xf32>, vector<4x256xf32>, vector<8x256xf32> -> vector<8x256xf32>
    %c0_7 = arith.constant 0 : index
    %c0_8 = arith.constant 0 : index
    %6 = vector.load %arg5[%c0_7, %c0_8] : memref<8x4xf32, #tpu.memory_space<vmem>>, vector<8x4xf32>
    %cst_9 = arith.constant dense<0.000000e+00> : vector<8x256xf32>
    %7 = tpu.matmul %6, %3, %cst_9 {dimension_numbers = #tpu.dot_dimension_numbers<[1], [0], [0], [1], [0, 0, 1, 1], [], []>} : vector<8x4xf32>, vector<4x256xf32>, vector<8x256xf32> -> vector<8x256xf32>
    %8 = arith.addf %5, %7 : vector<8x256xf32>
    %c0_10 = arith.constant 0 : index
    %c0_11 = arith.constant 0 : index
    %9 = vector.load %arg6[%c0_10, %c0_11] : memref<8x1xf32, #tpu.memory_space<vmem>>, vector<8x1xf32>
    %10 = vector.broadcast %9 : vector<8x1xf32> to vector<8x256xf32>
    %11 = arith.addf %8, %10 : vector<8x256xf32>
    %cst_12 = arith.constant 0.000000e+00 : f32
    %12 = vector.broadcast %cst_12 : f32 to vector<8x256xf32>
    %13 = arith.maximumf %11, %12 : vector<8x256xf32>
    %c0_13 = arith.constant 0 : index
    %c0_14 = arith.constant 0 : index
    %14 = vector.load %arg7[%c0_13, %c0_14] : memref<8x1xf32, #tpu.memory_space<vmem>>, vector<8x1xf32>
    %15 = vector.broadcast %14 : vector<8x1xf32> to vector<8x256xf32>
    %16 = arith.mulf %13, %15 : vector<8x256xf32>
    %cst_15 = arith.constant dense<0.000000e+00> : vector<256xf32>
    %17 = vector.multi_reduction <add>, %16, %cst_15 [0] : vector<8x256xf32> to vector<256xf32>
    %18 = vector.shape_cast %17 : vector<256xf32> to vector<1x256xf32>
    %c0_16 = arith.constant 0 : index
    %c0_17 = arith.constant 0 : index
    %19 = vector.load %arg8[%c0_16, %c0_17] : memref<1x1xf32, #tpu.memory_space<vmem>>, vector<1x1xf32>
    %20 = vector.broadcast %19 : vector<1x1xf32> to vector<1x256xf32>
    %21 = arith.addf %18, %20 : vector<1x256xf32>
    %22 = arith.negf %21 : vector<1x256xf32>
    %23 = math.exp %22 : vector<1x256xf32>
    %cst_18 = arith.constant 1.000000e+00 : f32
    %24 = vector.broadcast %cst_18 : f32 to vector<1x256xf32>
    %25 = arith.addf %24, %23 : vector<1x256xf32>
    %26 = arith.divf %24, %25 : vector<1x256xf32>
    %27 = vector.broadcast %26 : vector<1x256xf32> to vector<4x256xf32>
    %28 = arith.mulf %3, %27 : vector<4x256xf32>
    %c0_19 = arith.constant 0 : index
    %c0_20 = arith.constant 0 : index
    %c0_21 = arith.constant 0 : index
    %29 = vector.load %arg9[%c0_19, %c0_20, %c0_21] : memref<2x4x256xf32, #tpu.memory_space<vmem>>, vector<1x4x256xf32>
    %30 = vector.shape_cast %29 : vector<1x4x256xf32> to vector<4x256xf32>
    %31 = vector.shape_cast %28 : vector<4x256xf32> to vector<1x4x256xf32>
    tpu.vector_store %arg9[%c0_19, %c0_20, %c0_21], %31 {strides = array<i32>} : memref<2x4x256xf32, #tpu.memory_space<vmem>>, vector<1x4x256xf32>,
    %c1 = arith.constant 1 : index
    %c0_22 = arith.constant 0 : index
    %c0_23 = arith.constant 0 : index
    %32 = vector.load %arg2[%c1, %c0_22, %c0_23] : memref<2x4x256xf32, #tpu.memory_space<vmem>>, vector<1x4x256xf32>
    %33 = vector.shape_cast %32 : vector<1x4x256xf32> to vector<4x256xf32>
    %c1_24 = arith.constant 1 : index
    %c0_25 = arith.constant 0 : index
    %c0_26 = arith.constant 0 : index
    %34 = vector.load %arg3[%c1_24, %c0_25, %c0_26] : memref<2x4x256xf32, #tpu.memory_space<vmem>>, vector<1x4x256xf32>
    %35 = vector.shape_cast %34 : vector<1x4x256xf32> to vector<4x256xf32>
    %c0_27 = arith.constant 0 : index
    %c0_28 = arith.constant 0 : index
    %36 = vector.load %arg4[%c0_27, %c0_28] : memref<8x4xf32, #tpu.memory_space<vmem>>, vector<8x4xf32>
    %cst_29 = arith.constant dense<0.000000e+00> : vector<8x256xf32>
    %37 = tpu.matmul %36, %33, %cst_29 {dimension_numbers = #tpu.dot_dimension_numbers<[1], [0], [0], [1], [0, 0, 1, 1], [], []>} : vector<8x4xf32>, vector<4x256xf32>, vector<8x256xf32> -> vector<8x256xf32>
    %c0_30 = arith.constant 0 : index
    %c0_31 = arith.constant 0 : index
    %38 = vector.load %arg5[%c0_30, %c0_31] : memref<8x4xf32, #tpu.memory_space<vmem>>, vector<8x4xf32>
    %cst_32 = arith.constant dense<0.000000e+00> : vector<8x256xf32>
    %39 = tpu.matmul %38, %35, %cst_32 {dimension_numbers = #tpu.dot_dimension_numbers<[1], [0], [0], [1], [0, 0, 1, 1], [], []>} : vector<8x4xf32>, vector<4x256xf32>, vector<8x256xf32> -> vector<8x256xf32>
    %40 = arith.addf %37, %39 : vector<8x256xf32>
    %c0_33 = arith.constant 0 : index
    %c0_34 = arith.constant 0 : index
    %41 = vector.load %arg6[%c0_33, %c0_34] : memref<8x1xf32, #tpu.memory_space<vmem>>, vector<8x1xf32>
    %42 = vector.broadcast %41 : vector<8x1xf32> to vector<8x256xf32>
    %43 = arith.addf %40, %42 : vector<8x256xf32>
    %cst_35 = arith.constant 0.000000e+00 : f32
    %44 = vector.broadcast %cst_35 : f32 to vector<8x256xf32>
    %45 = arith.maximumf %43, %44 : vector<8x256xf32>
    %c0_36 = arith.constant 0 : index
    %c0_37 = arith.constant 0 : index
    %46 = vector.load %arg7[%c0_36, %c0_37] : memref<8x1xf32, #tpu.memory_space<vmem>>, vector<8x1xf32>
    %47 = vector.broadcast %46 : vector<8x1xf32> to vector<8x256xf32>
    %48 = arith.mulf %45, %47 : vector<8x256xf32>
    %cst_38 = arith.constant dense<0.000000e+00> : vector<256xf32>
    %49 = vector.multi_reduction <add>, %48, %cst_38 [0] : vector<8x256xf32> to vector<256xf32>
    %50 = vector.shape_cast %49 : vector<256xf32> to vector<1x256xf32>
    %c0_39 = arith.constant 0 : index
    %c0_40 = arith.constant 0 : index
    %51 = vector.load %arg8[%c0_39, %c0_40] : memref<1x1xf32, #tpu.memory_space<vmem>>, vector<1x1xf32>
    %52 = vector.broadcast %51 : vector<1x1xf32> to vector<1x256xf32>
    %53 = arith.addf %50, %52 : vector<1x256xf32>
    %54 = arith.negf %53 : vector<1x256xf32>
    %55 = math.exp %54 : vector<1x256xf32>
    %cst_41 = arith.constant 1.000000e+00 : f32
    %56 = vector.broadcast %cst_41 : f32 to vector<1x256xf32>
    %57 = arith.addf %56, %55 : vector<1x256xf32>
    %58 = arith.divf %56, %57 : vector<1x256xf32>
    %59 = vector.broadcast %58 : vector<1x256xf32> to vector<4x256xf32>
    %60 = arith.mulf %35, %59 : vector<4x256xf32>
    %c1_42 = arith.constant 1 : index
    %c0_43 = arith.constant 0 : index
    %c0_44 = arith.constant 0 : index
    %61 = vector.load %arg9[%c1_42, %c0_43, %c0_44] : memref<2x4x256xf32, #tpu.memory_space<vmem>>, vector<1x4x256xf32>
    %62 = vector.shape_cast %61 : vector<1x4x256xf32> to vector<4x256xf32>
    %63 = vector.shape_cast %60 : vector<4x256xf32> to vector<1x4x256xf32>
    tpu.vector_store %arg9[%c1_42, %c0_43, %c0_44], %63 {strides = array<i32>} : memref<2x4x256xf32, #tpu.memory_space<vmem>>, vector<1x4x256xf32>,
    return
  }
  func.func @transform_0(%arg0: i32, %arg1: i32) -> (i32, i32, i32) {
    %c0_i32 = arith.constant 0 : i32
    %c0_i32_0 = arith.constant 0 : i32
    return %arg0, %c0_i32, %arg1 : i32, i32, i32
  }
  func.func @transform_1(%arg0: i32, %arg1: i32) -> (i32, i32, i32) {
    %c0_i32 = arith.constant 0 : i32
    %c0_i32_0 = arith.constant 0 : i32
    return %arg0, %c0_i32, %arg1 : i32, i32, i32
  }
  func.func @transform_2(%arg0: i32, %arg1: i32) -> (i32, i32) {
    %c0_i32 = arith.constant 0 : i32
    %c0_i32_0 = arith.constant 0 : i32
    %c0_i32_1 = arith.constant 0 : i32
    return %c0_i32, %c0_i32_0 : i32, i32
  }
  func.func @transform_3(%arg0: i32, %arg1: i32) -> (i32, i32) {
    %c0_i32 = arith.constant 0 : i32
    %c0_i32_0 = arith.constant 0 : i32
    %c0_i32_1 = arith.constant 0 : i32
    return %c0_i32, %c0_i32_0 : i32, i32
  }
  func.func @transform_4(%arg0: i32, %arg1: i32) -> (i32, i32) {
    %c0_i32 = arith.constant 0 : i32
    %c0_i32_0 = arith.constant 0 : i32
    %c0_i32_1 = arith.constant 0 : i32
    return %c0_i32, %c0_i32_0 : i32, i32
  }
  func.func @transform_5(%arg0: i32, %arg1: i32) -> (i32, i32) {
    %c0_i32 = arith.constant 0 : i32
    %c0_i32_0 = arith.constant 0 : i32
    %c0_i32_1 = arith.constant 0 : i32
    return %c0_i32, %c0_i32_0 : i32, i32
  }
  func.func @transform_6(%arg0: i32, %arg1: i32) -> (i32, i32) {
    %c0_i32 = arith.constant 0 : i32
    %c0_i32_0 = arith.constant 0 : i32
    %c0_i32_1 = arith.constant 0 : i32
    return %c0_i32, %c0_i32_0 : i32, i32
  }
  func.func @transform_7(%arg0: i32, %arg1: i32) -> (i32, i32, i32) {
    %c0_i32 = arith.constant 0 : i32
    %c0_i32_0 = arith.constant 0 : i32
    return %arg0, %c0_i32, %arg1 : i32, i32, i32
  }
}

</mosaic_0001>

<bundles_post_ra>
// kernel: tpu_custom_call.1
= control target key start
LH: loop header
LB: loop body
LE: loop exit
PB: predicated region body
PF: predicated region fallthrough
CT: control target
= control target key end

     0   :  { %s662_s0 = inlined_call_operand.vmem [shape: f32[2,4,256], index: 0, kind: input, shape index: {}]   ;;  %s663_s1 = inlined_call_operand.hbm [shape: f32[2,4,256], index: 1, kind: input, shape index: {}]   ;;  %s664_s2 = inlined_call_operand.vmem [shape: f32[8,4], index: 2, kind: input, shape index: {}]   ;;  %s665_s3 = inlined_call_operand.vmem [shape: f32[8,4], index: 3, kind: input, shape index: {}]   ;;  %s666_s4 = inlined_call_operand.vmem [shape: f32[8,1], index: 4, kind: input, shape index: {}]   ;;  %s667_s5 = inlined_call_operand.vmem [shape: f32[8,1], index: 5, kind: input, shape index: {}]   ;;  %s668_s6 = inlined_call_operand.<no memory space> [shape: f32[1,1], index: 6, kind: input, shape index: {}]   ;;  %s669_s7 = inlined_call_operand.hbm [shape: f32[2,4,256], index: 7, kind: output, shape index: {}]  }
   0x1   :  { %v12_v0 = vstv %s668_s6 }
   0x2   :  { %13 = vst [vmem:[#allocation2] sm:$0x1] %v12_v0 }
   0x3   :  { %14 = vsyncpa [#allocation4], 0 }
   0x4   :  { %15 = vsyncpa [#allocation5], 0  ;;  %s22_s28 = sshll.u32 %s663_s1, 4  ;;  %s546_s29 = smov [#allocation3]   ;;  %s23_s28 = int_to_ptr.hbm [resolvable:$true] %s22_s28 }
   0x5   :  { %s24_s30 = sshll.u32 %s546_s29, 4  ;;  %s547_s8 = smov 128   ;;  %s25_s30 = int_to_ptr.vmem [resolvable:$true] %s24_s30 }
   0x6   :  { %s548_s9 = smov 8  }
   0x7   :  { %30 = dma.hbm_to_vmem [thread:$0]  %s23_s28, 256, %s25_s30, [#allocation4], %s547_s8, %s547_s8, %s548_s9  }
   0x8   :  { %542 = dma.done.wait [#allocation4], 256  }
   0x9   :  { %543 = vsyncadd [#allocation4], 4294967040  ;;  %v600_v1 = vld [vmem:[#allocation3] sm:$0xff]  ;;  %v153_v2 = vld [vmem:[%s666_s4] sm:$0xff]  ;;  %v549_v4 = vmov 0   ;;  %vm57_vm0 = vcmask 1043456  }
   0xa   :  { %50 = vst [vmem:[#allocation1] ss:$2 sm:$0xff] %v600_v1  ;;  %v163_v3 = vld [vmem:[%s667_s5] sm:$0xff]  ;;  %475 = vset.pattern.permute.xlu0 %v549_v4  ;;  %476 = vset.pattern.permute.xlu1 %v549_v4  ;;  %v183_v5 = vld [vmem:[#allocation2] sm:$0x1]  ;;  %vm53_vm1 = vcmask 31744  }
   0xb   :  { %156 = vperm.xlu0 %475, %v153_v2   ;;  %166 = vperm.xlu1 %476, %v163_v3   ;;  %v45_v6 = vld [vmem:[%s662_s0] sm:$0xff]  ;;  %v375_v10 = vld [vmem:[#allocation2] sm:$0x1]  ;;  %v619_v11 = vld [vmem:[#allocation3 + $0x8] sm:$0xff]  ;;  %s436_s19 = sshll.u32 %s669_s7, 4  ;;  %s437_s19 = int_to_ptr.hbm [resolvable:$true] %s436_s19 }
   0xc   :  { %477 = vset.pattern.permute.xlu2 %v549_v4  ;;  %v48_v7 = vld [vmem:[%s665_s3] sm:$0xff]  ;;  %v459_v15 = vld [vmem:[%s662_s0 + $0x8] sm:$0xff]  ;;  %s550_s0 = smov [#allocation6]  }
   0xd   :  { %186 = vperm.xlu2 %477, %v183_v5   ;;  %v47_v12 = vld [vmem:[%s664_s2] sm:$0xff]  ;;  %s434_s2 = sshll.u32 %s550_s0, 4  ;;  %s435_s2 = int_to_ptr.vmem [resolvable:$true] %s434_s2 }
  0x11   :  { %v51_v8 = vld.sshfl [vmem:[#allocation1] sm:$0xff pattern:$0x75316420]  ;;  %v52_v9 = vld.sshfl [vmem:[#allocation1 + $0x8] sm:$0xff pattern:$0x75316420] }
  0x12   :  { %103 = vst [vmem:[#allocation1] ss:$2 sm:$0xff] %v45_v6  ;;  %449 = vmatpush.msk.msra.mxu0 %vm57_vm0, %v51_v8  ;;  %451 = vmatpush.msk.msra.mxu1 %vm57_vm0, %v52_v9 }
  0x13   :  { %450 = vmatmul.msk.f32.vlgmr.msra.gmra.mxu0 %vm53_vm1, %v48_v7  ;;  %452 = vmatmul.msk.f32.vlgmr.msra.gmra.mxu1 %vm53_vm1, %v48_v7 }
  0x14   :  { %348 = vperm.xlu0 %475, %v153_v2   ;;  %358 = vperm.xlu1 %476, %v163_v3  }
  0x15   :  { %378 = vperm.xlu2 %477, %v375_v10  }
  0x19   :  { %v104_v13 = vld.sshfl [vmem:[#allocation1] sm:$0xff pattern:$0x75316420]  ;;  %v105_v14 = vld.sshfl [vmem:[#allocation1 + $0x8] sm:$0xff pattern:$0x75316420] }
  0x1a   :  { %453 = vmatpush.msk.msra.mxu2 %vm57_vm0, %v104_v13  ;;  %455 = vmatpush.msk.msra.mxu3 %vm57_vm0, %v105_v14  ;;  %244 = vst [vmem:[#allocation1] ss:$2 sm:$0xff] %v619_v11 }
  0x1b   :  { %454 = vmatmul.msk.f32.vlgmr.msra.gmra.mxu2 %vm53_vm1, %v47_v12  ;;  %456 = vmatmul.msk.f32.vlgmr.msra.gmra.mxu3 %vm53_vm1, %v47_v12 }
  0x21   :  { %v245_v16 = vld.sshfl [vmem:[#allocation1] sm:$0xff pattern:$0x75316420]  ;;  %v246_v17 = vld.sshfl [vmem:[#allocation1 + $0x8] sm:$0xff pattern:$0x75316420] }
  0x22   :  { %295 = vst [vmem:[#allocation1] ss:$2 sm:$0xff] %v459_v15  ;;  %460 = vmatpush.msk.msrb.mxu0 %vm57_vm0, %v245_v16  ;;  %462 = vmatpush.msk.msrb.mxu1 %vm57_vm0, %v246_v17 }
  0x23   :  { %461 = vmatmul.msk.f32.vlgmr.msrb.gmra.mxu0 %vm53_vm1, %v48_v7  ;;  %463 = vmatmul.msk.f32.vlgmr.msrb.gmra.mxu1 %vm53_vm1, %v48_v7 }
  0x29   :  { %v296_v18 = vld.sshfl [vmem:[#allocation1] sm:$0xff pattern:$0x75316420]  ;;  %v297_v19 = vld.sshfl [vmem:[#allocation1 + $0x8] sm:$0xff pattern:$0x75316420] }
  0x2a   :  { %464 = vmatpush.msk.msrb.mxu2 %vm57_vm0, %v296_v18  ;;  %466 = vmatpush.msk.msrb.mxu3 %vm57_vm0, %v297_v19 }
  0x2b   :  { %465 = vmatmul.msk.f32.vlgmr.msrb.gmra.mxu2 %vm53_vm1, %v47_v12  ;;  %467 = vmatmul.msk.f32.vlgmr.msrb.gmra.mxu3 %vm53_vm1, %v47_v12 }
  0x67   :  { %v187_v40 = vpop.permute.xlu2 %186 }
  0x68   :  { %v189_v47 = vperm.slane %v187_v40, 0 }
  0x6f   :  { %v379_v15 = vpop.permute.xlu2 %378 }
  0x7d   :  { %v157_v22 = vpop.permute.xlu0 %156  ;;  %v167_v29 = vpop.permute.xlu1 %166 }
  0x86   :  { %v349_v52 = vpop.permute.xlu0 %348  ;;  %v359_v61 = vpop.permute.xlu1 %358 }
  0x90   :  { %v79_v20 = vpop.f32.mrf.mxu0  ;;  %v99_v21 = vpop.f32.mrf.mxu1 }
  0x9e   :  { %v130_v23 = vpop.f32.mrf.mxu2  ;;  %v150_v24 = vpop.f32.mrf.mxu3 }
  0x9f   :  { %v131_v25 = vadd.f32 %v130_v23, %v79_v20  ;;  %v151_v26 = vadd.f32 %v150_v24, %v99_v21  ;;  %v381_v20 = vperm.slane %v379_v15, 0 }
  0xa0   :  { %v271_v41 = vpop.f32.mrf.mxu0  ;;  %v291_v42 = vpop.f32.mrf.mxu1 }
  0xa1   :  { %v159_v27 = vadd.f32 %v157_v22, %v131_v25  ;;  %v160_v28 = vadd.f32 %v157_v22, %v151_v26 }
  0xa3   :  { %v161_v30 = vmax.f32 %v159_v27, 0.0  ;;  %v162_v31 = vmax.f32 %v160_v28, 0.0 }
  0xa5   :  { %v169_v32 = vmul.f32 %v167_v29, %v161_v30  ;;  %v170_v33 = vmul.f32 %v167_v29, %v162_v31 }
  0xa7   :  { %v171_v34 = vrot.slane %v169_v32, 4  ;;  %v177_v35 = vrot.slane %v170_v33, 4 }
  0xa9   :  { %v172_v36 = vadd.f32 %v171_v34, %v169_v32  ;;  %v178_v37 = vadd.f32 %v177_v35, %v170_v33 }
  0xab   :  { %v173_v38 = vrot.slane %v172_v36, 2  ;;  %v179_v39 = vrot.slane %v178_v37, 2 }
  0xad   :  { %v174_v43 = vadd.f32 %v173_v38, %v172_v36  ;;  %v180_v44 = vadd.f32 %v179_v39, %v178_v37 }
  0xae   :  { %v322_v45 = vpop.f32.mrf.mxu2  ;;  %v342_v46 = vpop.f32.mrf.mxu3 }
  0xaf   :  { %v323_v48 = vadd.f32 %v322_v45, %v271_v41  ;;  %v343_v49 = vadd.f32 %v342_v46, %v291_v42  ;;  %v175_v50 = vrot.slane %v174_v43, 1  ;;  %v181_v51 = vrot.slane %v180_v44, 1 }
  0xb1   :  { %v351_v53 = vadd.f32 %v349_v52, %v323_v48  ;;  %v352_v54 = vadd.f32 %v349_v52, %v343_v49  ;;  %v176_v55 = vadd.f32 %v175_v50, %v174_v43  ;;  %v182_v56 = vadd.f32 %v181_v51, %v180_v44 }
  0xb3   :  { %v353_v57 = vmax.f32 %v351_v53, 0.0  ;;  %v354_v58 = vmax.f32 %v352_v54, 0.0  ;;  %v190_v59 = vadd.f32 %v189_v47, %v176_v55  ;;  %v191_v60 = vadd.f32 %v189_v47, %v182_v56 }
  0xb5   :  { %v457_v62 = vmul.f32 -1.442695, %v190_v59  ;;  %v458_v63 = vmul.f32 -1.442695, %v191_v60  ;;  %v361_v0 = vmul.f32 %v359_v61, %v353_v57  ;;  %v362_v2 = vmul.f32 %v359_v61, %v354_v58 }
  0xb7   :  { %478 = vpow2.f32 %v457_v62  ;;  %v363_v3 = vrot.slane %v361_v0, 4  ;;  %v369_v4 = vrot.slane %v362_v2, 4 }
  0xb8   :  { %480 = vpow2.f32 %v458_v63 }
  0xb9   :  { %v364_v5 = vadd.f32 %v363_v3, %v361_v0  ;;  %v370_v6 = vadd.f32 %v369_v4, %v362_v2 }
  0xbb   :  { %v365_v7 = vrot.slane %v364_v5, 2  ;;  %v371_v8 = vrot.slane %v370_v6, 2 }
  0xbd   :  { %v479_v9 = vpop.eup %478  ;;  %v366_v10 = vadd.f32 %v365_v7, %v364_v5  ;;  %v372_v12 = vadd.f32 %v371_v8, %v370_v6 }
  0xbe   :  { %v481_v13 = vpop.eup %480  ;;  %v198_v14 = vadd.f32 1.0, %v479_v9 }
  0xbf   :  { %v199_v16 = vadd.f32 1.0, %v481_v13  ;;  %v367_v17 = vrot.slane %v366_v10, 1  ;;  %v373_v18 = vrot.slane %v372_v12, 1 }
  0xc0   :  { %482 = vrcp.f32 %v198_v14  ;;  %vm205_vm4 = vweird.f32 %v198_v14  ;;  %v211_v38 = vand.u32 2147483648, %v198_v14  ;;  %v209_v42 = vand.u32 2147483647, %v198_v14 }
  0xc1   :  { %484 = vrcp.f32 %v199_v16  ;;  %v368_v19 = vadd.f32 %v367_v17, %v366_v10  ;;  %v374_v21 = vadd.f32 %v373_v18, %v372_v12  ;;  %v226_v32 = vand.u32 2147483648, %v199_v16 }
  0xc2   :  { %v224_v35 = vand.u32 2147483647, %v199_v16  ;;  %vm220_vm5 = vweird.f32 %v199_v16  ;;  %v212_v48 = vor.u32 1.1754944e-38, %v211_v38  ;;  %vm210_vm9 = vcmp.eq.f32.partialorder %v209_v42, 8.507059e+37 }
  0xc3   :  { %v382_v22 = vadd.f32 %v381_v20, %v368_v19  ;;  %v383_v23 = vadd.f32 %v381_v20, %v374_v21  ;;  %v227_v45 = vor.u32 1.1754944e-38, %v226_v32 }
  0xc4   :  { %vm225_vm8 = vcmp.eq.f32.partialorder %v224_v35, 8.507059e+37 }
  0xc5   :  { %v468_v24 = vmul.f32 -1.442695, %v382_v22  ;;  %v469_v26 = vmul.f32 -1.442695, %v383_v23 }
  0xc6   :  { %v483_v25 = vpop.eup %482 }
  0xc7   :  { %v485_v27 = vpop.eup %484  ;;  %v201_v28 = vmul.f32 %v483_v25, %v198_v14  ;;  %486 = vpow2.f32 %v468_v24  ;;  %vm206_vm2 = vweird.f32 %v483_v25 }
  0xc8   :  { %v216_v29 = vmul.f32 %v485_v27, %v199_v16  ;;  %488 = vpow2.f32 %v469_v26  ;;  %vm221_vm3 = vweird.f32 %v485_v27  ;;  %vm640_vm6 = vmor %vm205_vm4, %vm206_vm2 }
  0xc9   :  { %v202_v30 = vsub.f32 1.0, %v201_v28  ;;  %vm222_vm7 = vmor %vm220_vm5, %vm221_vm3 }
  0xca   :  { %v217_v31 = vsub.f32 1.0, %v216_v29 }
  0xcb   :  { %v203_v33 = vmul.f32 %v483_v25, %v202_v30 }
  0xcc   :  { %v218_v34 = vmul.f32 %v485_v27, %v217_v31 }
  0xcd   :  { %v487_v36 = vpop.eup %486  ;;  %v204_v37 = vadd.f32 %v483_v25, %v203_v33 }
  0xce   :  { %v489_v39 = vpop.eup %488  ;;  %v390_v40 = vadd.f32 1.0, %v487_v36  ;;  %v219_v43 = vadd.f32 %v485_v27, %v218_v34 }
  0xcf   :  { %v391_v44 = vadd.f32 1.0, %v489_v39  ;;  %v208_v46 = vsel %vm640_vm6, %v483_v25, %v204_v37 }
  0xd0   :  { %490 = vrcp.f32 %v390_v40  ;;  %v223_v47 = vsel %vm222_vm7, %v485_v27, %v219_v43  ;;  %v213_v51 = vsel %vm210_vm9, %v212_v48, %v208_v46  ;;  %vm397_vm12 = vweird.f32 %v390_v40 }
  0xd1   :  { %492 = vrcp.f32 %v391_v44  ;;  %v228_v49 = vsel %vm225_vm8, %v227_v45, %v223_v47  ;;  %v418_v61 = vand.u32 2147483648, %v391_v44  ;;  %v416_v63 = vand.u32 2147483647, %v391_v44 }
  0xd2   :  { %v232_v50 = vrot.slane %v228_v49, 4  ;;  %v403_v2 = vand.u32 2147483648, %v390_v40  ;;  %vm412_vm13 = vweird.f32 %v391_v44 }
  0xd3   :  { %v419_v5 = vor.u32 1.1754944e-38, %v418_v61  ;;  %vm417_vm1 = vcmp.eq.f32.partialorder %v416_v63, 8.507059e+37 }
  0xd4   :  { %v233_v52 = vsel %vm57_vm0, %v213_v51, %v232_v50  ;;  %v404_v8 = vor.u32 1.1754944e-38, %v403_v2 }
  0xd5   :  { %v235_v53 = vmul.f32 %v233_v52, %v600_v1  ;;  %v401_v1 = vand.u32 2147483647, %v390_v40 }
  0xd6   :  { %v491_v54 = vpop.eup %490 }
  0xd7   :  { %v493_v55 = vpop.eup %492  ;;  %v393_v56 = vmul.f32 %v491_v54, %v390_v40  ;;  %236 = vst [vmem:[#allocation6] sm:$0xff] %v235_v53  ;;  %vm398_vm10 = vweird.f32 %v491_v54  ;;  %vm402_vm2 = vcmp.eq.f32.partialorder %v401_v1, 8.507059e+37 }
  0xd8   :  { %v408_v57 = vmul.f32 %v493_v55, %v391_v44  ;;  %vm413_vm11 = vweird.f32 %v493_v55  ;;  %vm648_vm14 = vmor %vm397_vm12, %vm398_vm10 }
  0xd9   :  { %v394_v58 = vsub.f32 1.0, %v393_v56  ;;  %vm414_vm15 = vmor %vm412_vm13, %vm413_vm11 }
  0xda   :  { %v409_v59 = vsub.f32 1.0, %v408_v57 }
  0xdb   :  { %v395_v60 = vmul.f32 %v491_v54, %v394_v58 }
  0xdc   :  { %v410_v62 = vmul.f32 %v493_v55, %v409_v59 }
  0xdd   :  { %v396_v0 = vadd.f32 %v491_v54, %v395_v60 }
  0xde   :  { %v411_v4 = vadd.f32 %v493_v55, %v410_v62 }
  0xdf   :  { %v400_v6 = vsel %vm648_vm14, %v491_v54, %v396_v0 }
  0xe0   :  { %v415_v7 = vsel %vm414_vm15, %v493_v55, %v411_v4  ;;  %v405_v12 = vsel %vm402_vm2, %v404_v8, %v400_v6 }
  0xe1   :  { %v420_v9 = vsel %vm417_vm1, %v419_v5, %v415_v7 }
  0xe2   :  { %v424_v10 = vrot.slane %v420_v9, 4 }
  0xe4   :  { %v425_v13 = vsel %vm57_vm0, %v405_v12, %v424_v10 }
  0xe5   :  { %v427_v14 = vmul.f32 %v425_v13, %v619_v11 }
  0xe7   :  { %429 = vst [vmem:[#allocation6 + $0x8] sm:$0xff] %v427_v14 }
  0xe8   :  { %442 = dma.vmem_to_hbm [thread:$0]  %s435_s2, 256, %s437_s19, [#allocation5], %s547_s8, %s547_s8, %s548_s9  }
  0xe9   :  { %544 = dma.done.wait [#allocation5], 256  }
  0xea   :  { %545 = vsyncadd [#allocation5], 4294967040 }
  0xeb   :  { %447 = vsyncpa [#allocation4], 1 }
  0xec   :  { %448 = vsyncpa [#allocation5], 1 }

</bundles_post_ra>
